<compile_context>
chip_gen: v7x
topology: tpu7x:2x2x1
jax: 0.10.0
libtpu: 0.0.40
codegen_flags: <defaults>
</compile_context>

<pallas_src>
import functools

import jax
import jax.numpy as jnp
from jax.experimental import pallas as pl
from jax.experimental.pallas import tpu as pltpu


def _round_up(x, m):
    return ((x + m - 1) // m) * m


def agent_kernel(x_ref, wc_ref, bc_ref, wf_ref, bf_ref, o_ref):
    # x_ref:  (TILE_N, 64)   flattened 8x8 input patch per sample
    # wc_ref: (64, 64)       conv weight, reshaped & transposed (in_pix, out_ch)
    # bc_ref: (1, 64)        conv bias
    # wf_ref: (64, S_PAD)    fc1 weight transposed, zero-padded to 128 lanes
    # bf_ref: (1, S_PAD)     fc1 bias, zero-padded to 128 lanes
    # o_ref:  (TILE_N, S_PAD) padded agent representation
    x = x_ref[...]
    conv = jnp.dot(x, wc_ref[...], preferred_element_type=jnp.float32) + bc_ref[...]
    h = jnp.maximum(conv, 0.0)  # F.relu (VPU filler under the MXU slot)
    o_ref[...] = (jnp.dot(h, wf_ref[...], preferred_element_type=jnp.float32)
                  + bf_ref[...]).astype(o_ref.dtype)


def prepare_agent_params(conv_w, conv_b, fc_w, fc_b):
    """One-time parameter preprocessing (do NOT redo this per forward).

    conv_w: (64, 1, 8, 8); conv_b: (64,); fc_w: (S, 64); fc_b: (S,).
    Returns (wc_t, bc2, wf_t_pad, bf2_pad, states_num).
    """
    states_num = fc_w.shape[0]
    s_pad = _round_up(max(states_num, 128), 128)  # lane-dense output width

    wc_t = conv_w.reshape(64, 64).T.astype(jnp.float32)      # (64, 64)
    bc2 = conv_b.reshape(1, 64).astype(jnp.float32)          # (1, 64)
    wf_t = jnp.zeros((64, s_pad), jnp.float32)
    wf_t = wf_t.at[:, :states_num].set(fc_w.T.astype(jnp.float32))
    bf2 = jnp.zeros((1, s_pad), jnp.float32)
    bf2 = bf2.at[:, :states_num].set(fc_b.astype(jnp.float32))
    return wc_t, bc2, wf_t, bf2, states_num


@functools.partial(jax.jit, static_argnames=("states_num",))
def agent_net_forward(x_nchw, wc_t, bc2, wf_t, bf2, *, states_num):
    """x_nchw: (N, 1, 8, 8) -> (N, states_num)."""
    N = x_nchw.shape[0]
    # The conv==matmul reduction only holds for exactly 8x8 spatial input.
    assert x_nchw.shape[1:] == (1, 8, 8), (
        f"AgentNet expects (N, 1, 8, 8) input, got {x_nchw.shape}")
    s_pad = wf_t.shape[1]

    x_flat = x_nchw.reshape(N, 64).astype(jnp.float32)  # (N, 64), row-major (i, j)

    # Batch tiling: small batches -> single block rounded to the sublane
    # multiple (8); large batches -> 512-row tiles, pipelined over a grid.
    max_tile = 512
    if N <= max_tile:
        tile_n = _round_up(N, 8)
        n_pad = tile_n
    else:
        tile_n = max_tile
        n_pad = _round_up(N, tile_n)
    if n_pad != N:
        x_flat = jnp.pad(x_flat, ((0, n_pad - N), (0, 0)))

    out = pl.pallas_call(
        agent_kernel,
        out_shape=jax.ShapeDtypeStruct((n_pad, s_pad), jnp.float32),
        grid=(n_pad // tile_n,),
        in_specs=[
            pl.BlockSpec((tile_n, 64), lambda i: (i, 0)),   # x: marched over batch
            pl.BlockSpec((64, 64), lambda i: (0, 0)),       # weights stay VMEM-resident
            pl.BlockSpec((1, 64), lambda i: (0, 0)),
            pl.BlockSpec((64, s_pad), lambda i: (0, 0)),
            pl.BlockSpec((1, s_pad), lambda i: (0, 0)),
        ],
        out_specs=pl.BlockSpec((tile_n, s_pad), lambda i: (i, 0)),
        compiler_params=pltpu.CompilerParams(
            dimension_semantics=("parallel",)),  # v7x: shard batch over both TCs
    )(x_flat, wc_t, bc2, wf_t, bf2)

    return out[:N, :states_num]


if __name__ == "__main__":
    # Deterministic parameter / input construction (synthetic, no checkpoint).
    key = jax.random.PRNGKey(0)
    k_x, k_cw, k_cb, k_fw, k_fb = jax.random.split(key, 5)

    N = 2
    states_num = 16

    # Input: NCHW, spatial must be 8x8 so conv output is (N, 64, 1, 1),
    # matching the .squeeze() -> Linear(64, states_num) path.
    x = jax.random.normal(k_x, (N, 1, 8, 8), dtype=jnp.float32)

    # Parameters (shapes from nn.Conv2d(1, 64, 8) and nn.Linear(64, states_num)).
    conv_w = jax.random.normal(k_cw, (64, 1, 8, 8), dtype=jnp.float32) * 0.1
    conv_b = jax.random.normal(k_cb, (64,), dtype=jnp.float32) * 0.1
    fc_w = jax.random.normal(k_fw, (states_num, 64), dtype=jnp.float32) * 0.1
    fc_b = jax.random.normal(k_fb, (states_num,), dtype=jnp.float32) * 0.1

    # One-time preprocessing of parameters (hoisted out of the forward path).
    wc_t, bc2, wf_t, bf2, s = prepare_agent_params(conv_w, conv_b, fc_w, fc_b)

    out = agent_net_forward(x, wc_t, bc2, wf_t, bf2, states_num=s)
    jax.block_until_ready(out)

    # Pure-JAX reference check (same math, no Pallas).
    ref_conv = jnp.einsum("nij,cij->nc", x[:, 0], conv_w[:, 0]) + conv_b
    ref = jnp.maximum(ref_conv, 0.0) @ fc_w.T + fc_b
    assert out.shape == (N, states_num)
    assert jnp.allclose(out, ref, atol=1e-4, rtol=1e-4)

    print("KERNEL_OK")
</pallas_src>

<mosaic_0001>
module attributes {stable_mosaic.version = 11 : i64} {
  func.func @agent_kernel(%arg0: i32, %arg1: memref<8x64xf32, #tpu.memory_space<vmem>>, %arg2: memref<64x64xf32, #tpu.memory_space<vmem>>, %arg3: memref<1x64xf32, #tpu.memory_space<vmem>>, %arg4: memref<64x128xf32, #tpu.memory_space<vmem>>, %arg5: memref<1x128xf32, #tpu.memory_space<vmem>>, %arg6: memref<8x128xf32, #tpu.memory_space<vmem>>) attributes {dimension_semantics = [#tpu.dimension_semantics<parallel>], iteration_bounds = array<i64: 1>, scalar_prefetch = 0 : i64, scratch_operands = 0 : i64, tpu.core_type = #tpu.core_type<tc>, window_params = [{transform_indices = @transform_0, window_bounds = array<i64: 8, 64>}, {pipeline_mode = #tpu.pipeline_mode<synchronous>, transform_indices = @transform_1, window_bounds = array<i64: 64, 64>}, {pipeline_mode = #tpu.pipeline_mode<synchronous>, transform_indices = @transform_2, window_bounds = array<i64: 1, 64>}, {pipeline_mode = #tpu.pipeline_mode<synchronous>, transform_indices = @transform_3, window_bounds = array<i64: 64, 128>}, {pipeline_mode = #tpu.pipeline_mode<synchronous>, transform_indices = @transform_4, window_bounds = array<i64: 1, 128>}, {transform_indices = @transform_5, window_bounds = array<i64: 8, 128>}]} {
    %c0 = arith.constant 0 : index
    %c0_0 = arith.constant 0 : index
    %0 = vector.load %arg1[%c0, %c0_0] : memref<8x64xf32, #tpu.memory_space<vmem>>, vector<8x64xf32>
    %c0_1 = arith.constant 0 : index
    %c0_2 = arith.constant 0 : index
    %1 = vector.load %arg2[%c0_1, %c0_2] : memref<64x64xf32, #tpu.memory_space<vmem>>, vector<64x64xf32>
    %cst = arith.constant dense<0.000000e+00> : vector<8x64xf32>
    %2 = tpu.matmul %0, %1, %cst {dimension_numbers = #tpu.dot_dimension_numbers<[1], [0], [0], [1], [0, 0, 1, 1], [], []>} : vector<8x64xf32>, vector<64x64xf32>, vector<8x64xf32> -> vector<8x64xf32>
    %c0_3 = arith.constant 0 : index
    %c0_4 = arith.constant 0 : index
    %3 = vector.load %arg3[%c0_3, %c0_4] : memref<1x64xf32, #tpu.memory_space<vmem>>, vector<1x64xf32>
    %4 = vector.broadcast %3 : vector<1x64xf32> to vector<8x64xf32>
    %5 = arith.addf %2, %4 : vector<8x64xf32>
    %cst_5 = arith.constant 0.000000e+00 : f32
    %6 = vector.broadcast %cst_5 : f32 to vector<8x64xf32>
    %7 = arith.maximumf %5, %6 : vector<8x64xf32>
    %c0_6 = arith.constant 0 : index
    %c0_7 = arith.constant 0 : index
    %8 = vector.load %arg4[%c0_6, %c0_7] : memref<64x128xf32, #tpu.memory_space<vmem>>, vector<64x128xf32>
    %cst_8 = arith.constant dense<0.000000e+00> : vector<8x128xf32>
    %9 = tpu.matmul %7, %8, %cst_8 {dimension_numbers = #tpu.dot_dimension_numbers<[1], [0], [0], [1], [0, 0, 1, 1], [], []>} : vector<8x64xf32>, vector<64x128xf32>, vector<8x128xf32> -> vector<8x128xf32>
    %c0_9 = arith.constant 0 : index
    %c0_10 = arith.constant 0 : index
    %10 = vector.load %arg5[%c0_9, %c0_10] : memref<1x128xf32, #tpu.memory_space<vmem>>, vector<1x128xf32>
    %11 = vector.broadcast %10 : vector<1x128xf32> to vector<8x128xf32>
    %12 = arith.addf %9, %11 : vector<8x128xf32>
    %c0_11 = arith.constant 0 : index
    %c0_12 = arith.constant 0 : index
    %13 = vector.load %arg6[%c0_11, %c0_12] : memref<8x128xf32, #tpu.memory_space<vmem>>, vector<8x128xf32>
    tpu.vector_store %arg6[%c0_11, %c0_12], %12 {strides = array<i32>} : memref<8x128xf32, #tpu.memory_space<vmem>>, vector<8x128xf32>,
    return
  }
  func.func @transform_0(%arg0: i32) -> (i32, i32) {
    %c0_i32 = arith.constant 0 : i32
    %c0_i32_0 = arith.constant 0 : i32
    return %arg0, %c0_i32 : i32, i32
  }
  func.func @transform_1(%arg0: i32) -> (i32, i32) {
    %c0_i32 = arith.constant 0 : i32
    %c0_i32_0 = arith.constant 0 : i32
    %c0_i32_1 = arith.constant 0 : i32
    return %c0_i32, %c0_i32_0 : i32, i32
  }
  func.func @transform_2(%arg0: i32) -> (i32, i32) {
    %c0_i32 = arith.constant 0 : i32
    %c0_i32_0 = arith.constant 0 : i32
    %c0_i32_1 = arith.constant 0 : i32
    return %c0_i32, %c0_i32_0 : i32, i32
  }
  func.func @transform_3(%arg0: i32) -> (i32, i32) {
    %c0_i32 = arith.constant 0 : i32
    %c0_i32_0 = arith.constant 0 : i32
    %c0_i32_1 = arith.constant 0 : i32
    return %c0_i32, %c0_i32_0 : i32, i32
  }
  func.func @transform_4(%arg0: i32) -> (i32, i32) {
    %c0_i32 = arith.constant 0 : i32
    %c0_i32_0 = arith.constant 0 : i32
    %c0_i32_1 = arith.constant 0 : i32
    return %c0_i32, %c0_i32_0 : i32, i32
  }
  func.func @transform_5(%arg0: i32) -> (i32, i32) {
    %c0_i32 = arith.constant 0 : i32
    %c0_i32_0 = arith.constant 0 : i32
    return %arg0, %c0_i32 : i32, i32
  }
}

</mosaic_0001>

<bundles_post_ra>
// kernel: agent_net_forward.1
= control target key start
LH: loop header
LB: loop body
LE: loop exit
PB: predicated region body
PF: predicated region fallthrough
CT: control target
= control target key end

     0   :  { %10 = vsyncpa [#allocation3], 0  ;;  %s446_s0 = inlined_call_operand.vmem [shape: f32[8,64], index: 0, kind: input, shape index: {}]   ;;  %s447_s1 = inlined_call_operand.hbm [shape: f32[64,64], index: 1, kind: input, shape index: {}]   ;;  %s448_s2 = inlined_call_operand.vmem [shape: f32[1,64], index: 2, kind: input, shape index: {}]   ;;  %s449_s3 = inlined_call_operand.hbm [shape: f32[64,128], index: 3, kind: input, shape index: {}]   ;;  %s450_s4 = inlined_call_operand.vmem [shape: f32[1,128], index: 4, kind: input, shape index: {}]   ;;  %s451_s5 = inlined_call_operand.vmem [shape: f32[8,128], index: 5, kind: output, shape index: {}]  }
   0x1   :  { %11 = vsyncpa [#allocation5], 0  ;;  %s373_s18 = smov [#allocation2]   ;;  %s325_s22 = scalar_lea.hbm %s447_s1, 1024 }
   0x2   :  { %s19_s19 = sshll.u32 %s373_s18, 4  ;;  %p326_p0 = scmp.ne.s32.totalorder %s447_s1, %s325_s22  ;;  %s20_s19 = int_to_ptr.vmem [resolvable:$true] %s19_s19 }
   0x3   :  { %p329_p1 = scmp.lt.u32.totalorder %s325_s22, %s447_s1 }
   0x5   :  { %p331_p2 = pnand %p329_p1, %p326_p0 }
   0x7   :  { %334 = shalt.err (!%p331_p2)
}
   0x8   :  { %s335_s27 = scalar_lea.vmem %s20_s19, 1024  ;;  %p340_p4 = scmp.lt.s32.totalorder %s20_s19, %s20_s19 }
   0x9   :  { %p336_p3 = scmp.ne.s32.totalorder %s20_s19, %s335_s27  ;;  %p341_p5 = scmp.lt.s32.totalorder %s335_s27, %s335_s27 }
   0xb   :  { %p342_p6 = por %p341_p5, %p340_p4 }
   0xd   :  { %p343_p7 = pnand %p342_p6, %p336_p3 }
   0xf   :  { %346 = shalt.err (!%p343_p7)
}
  0x10   :  { %s374_s28 = smov 128   ;;  %s375_s29 = smov 8  }
  0x11   :  { %25 = dma.hbm_to_vmem [thread:$0]  %s447_s1, 1024, %s20_s19, [#allocation3], %s374_s28, %s374_s28, %s375_s29  }
  0x12   :  { %s376_s7 = smov [#allocation4]   ;;  %s347_s11 = scalar_lea.hbm %s449_s3, 1024 }
  0x13   :  { %s33_s8 = sshll.u32 %s376_s7, 4  ;;  %p348_p8 = scmp.ne.s32.totalorder %s449_s3, %s347_s11  ;;  %s34_s8 = int_to_ptr.vmem [resolvable:$true] %s33_s8 }
  0x14   :  { %p351_p9 = scmp.lt.u32.totalorder %s347_s11, %s449_s3 }
  0x16   :  { %p353_p10 = pnand %p351_p9, %p348_p8 }
  0x18   :  { %356 = shalt.err (!%p353_p10)
}
  0x19   :  { %s357_s16 = scalar_lea.vmem %s34_s8, 1024  ;;  %p362_p12 = scmp.lt.s32.totalorder %s34_s8, %s34_s8 }
  0x1a   :  { %p358_p11 = scmp.ne.s32.totalorder %s34_s8, %s357_s16  ;;  %p363_p13 = scmp.lt.s32.totalorder %s357_s16, %s357_s16 }
  0x1c   :  { %p364_p0 = por %p363_p13, %p362_p12 }
  0x1e   :  { %p365_p1 = pnand %p364_p0, %p358_p11 }
  0x20   :  { %368 = shalt.err (!%p365_p1)
}
  0x21   :  { %39 = dma.hbm_to_vmem [thread:$0]  %s449_s3, 1024, %s34_s8, [#allocation5], %s374_s28, %s374_s28, %s375_s29  }
  0x22   :  { %369 = dma.done.wait [#allocation3], 1024  }
  0x23   :  { %370 = vsyncadd [#allocation3], 4294966272 }
  0x24   :  { %371 = dma.done.wait [#allocation5], 1024  }
  0x25   :  { %372 = vsyncadd [#allocation5], 4294966272  ;;  %v377_v0 = vmov 0.0|0.0   ;;  %vm378_vm0 = vmmov 0   ;;  %v379_v1 = vmov 0.0   ;;  %v49_v2 = vld [vmem:[#allocation2] sm:$0xff] }
  0x26   :  { %294 = vmatprep.subr.bf16.mxu0 %v377_v0  ;;  %272 = vmatprep.mubr.msk.f32.mxu0 %vm378_vm0, %v379_v1  ;;  %v50_v3 = vld [vmem:[#allocation2 + $0x8] sm:$0xff]  ;;  %v51_v4 = vld [vmem:[#allocation2 + $0x10] sm:$0xff]  ;;  %v52_v6 = vld [vmem:[#allocation2 + $0x18] sm:$0xff]  ;;  %vm64_vm1 = vcmask 523264  }
  0x27   :  { %306 = vmatprep.subr.bf16.mxu1 %v377_v0  ;;  %291 = vmatprep.mubr.msk.f32.mxu1 %vm378_vm0, %v379_v1  ;;  %v295_v5 = vpack.c.bf16 %v50_v3, %v49_v2  ;;  %v298_v7 = vpack.c.bf16 %v52_v6, %v51_v4  ;;  %v139_v8 = vld [vmem:[#allocation4] sm:$0xff]  ;;  %v140_v9 = vld [vmem:[#allocation4 + $0x8] sm:$0xff]  ;;  %v141_v10 = vld [vmem:[#allocation4 + $0x10] sm:$0xff] }
  0x28   :  { %v53_v11 = vld [vmem:[#allocation2 + $0x20] sm:$0xff]  ;;  %v54_v12 = vld [vmem:[#allocation2 + $0x28] sm:$0xff]  ;;  %v307_v13 = vpack.c.bf16 %v140_v9, %v139_v8  ;;  %v142_v14 = vld [vmem:[#allocation4 + $0x18] sm:$0xff] }
  0x29   :  { %296 = vmatpush3.bf16.msra.mxu0 %v295_v5  ;;  %v310_v15 = vpack.c.bf16 %v142_v14, %v141_v10  ;;  %v301_v16 = vpack.c.bf16 %v54_v12, %v53_v11  ;;  %v143_v17 = vld [vmem:[#allocation4 + $0x20] sm:$0xff]  ;;  %v144_v18 = vld [vmem:[#allocation4 + $0x28] sm:$0xff]  ;;  %v55_v19 = vld [vmem:[#allocation2 + $0x30] sm:$0xff] }
  0x2a   :  { %297 = vmatprep.subr.bf16.mxu0 %v377_v0  ;;  %308 = vmatpush3.bf16.msra.mxu1 %v307_v13  ;;  %v56_v20 = vld [vmem:[#allocation2 + $0x38] sm:$0xff]  ;;  %v313_v21 = vpack.c.bf16 %v144_v18, %v143_v17  ;;  %v48_v23 = vld [vmem:[%s446_s0] sm:$0xff]  ;;  %v145_v24 = vld [vmem:[#allocation4 + $0x30] sm:$0xff] }
  0x2b   :  { %309 = vmatprep.subr.bf16.mxu1 %v377_v0  ;;  %v304_v22 = vpack.c.bf16 %v56_v20, %v55_v19  ;;  %v146_v25 = vld [vmem:[#allocation4 + $0x38] sm:$0xff]  ;;  %v234_v27 = vld [vmem:[%s448_s2] ss:$0 sm:$0xff] }
  0x2c   :  { %v316_v26 = vpack.c.bf16 %v146_v25, %v145_v24  ;;  %v236_v32 = vld [vmem:[%s450_s4] ss:$0 sm:$0xff] }
  0x2d   :  { %299 = vmatpush3.bf16.msra.mxu0 %v298_v7 }
  0x2e   :  { %300 = vmatprep.subr.bf16.mxu0 %v377_v0  ;;  %311 = vmatpush3.bf16.msra.mxu1 %v310_v15 }
  0x2f   :  { %312 = vmatprep.subr.bf16.mxu1 %v377_v0 }
  0x31   :  { %302 = vmatpush3.bf16.msra.mxu0 %v301_v16 }
  0x32   :  { %303 = vmatprep.subr.bf16.mxu0 %v377_v0  ;;  %314 = vmatpush3.bf16.msra.mxu1 %v313_v21 }
  0x33   :  { %315 = vmatprep.subr.bf16.mxu1 %v377_v0 }
  0x35   :  { %305 = vmatpush3.bf16.msra.mxu0 %v304_v22 }
  0x36   :  { %317 = vmatpush3.bf16.msra.mxu1 %v316_v26 }
  0x38   :  { %273 = vmatmul.mubr.msk.f32.vlgmr.msra.gmra.mrb[0].mxu0 %vm64_vm1, %v48_v23 }
 0x10b   :  { %v134_v28 = vpop.f32.mrb[0].mxu0 }
 0x10c   :  { %v135_v29 = vadd.f32 %v234_v27, %v134_v28  ;;  %v274_v30 = vpop.f32.mrb[1].mxu0 }
 0x10e   :  { %v138_v31 = vmax.f32 %v135_v29, 0.0 }
 0x110   :  { %292 = vmatmul.mubr.msk.f32.vlgmr.msra.gmra.mrb[0].mxu1 %vm64_vm1, %v138_v31 }
 0x1e3   :  { %v223_v33 = vpop.f32.mrb[0].mxu1 }
 0x1e4   :  { %v224_v34 = vadd.f32 %v236_v32, %v223_v33  ;;  %v293_v35 = vpop.f32.mrb[1].mxu1 }
 0x1e6   :  { %227 = vst [vmem:[%s451_s5] sm:$0xff] %v224_v34 }
 0x1e7   :  { %232 = vsyncpa [#allocation3], 1 }
 0x1e8   :  { %233 = vsyncpa [#allocation5], 1 }

</bundles_post_ra>
